<compile_context>
chip_gen: v6e
topology: v6e:2x2x1
jax: 0.10.0
libtpu: 0.0.40
codegen_flags: <defaults>
</compile_context>

<pallas_src>
import numpy as np
import jax
import jax.numpy as jnp
from jax import lax
from jax.experimental import pallas as pl
from jax.experimental.pallas import tpu as pltpu


def _self_attention_kernel(x_ref, w_ref, b_ref, o_ref):
    """Single grid step, all batches processed with per-batch contractions.

    x_ref : (B, N, C)        input tokens
    w_ref : (2N + C, N)      rows [0,N)=wq, [N,2N)=wk, [2N,2N+C) cols[:C] = wr^T
    b_ref : (N, C + 1)       cols [0,C) = combined convk bias (rowsum(wk)*br + bk),
                             col C = bq
    o_ref : (1, B*N)         lane-dense output row (reshaped to (B,N,1) by wrapper)
    """
    B, N, C = x_ref.shape
    G = N // C  # pooled groups per query row (== C when reduction_ratio == 1)

    # Constants loaded once (outside the batch loop).
    wq = w_ref[0:N, :]                  # (N, N)
    wk = w_ref[N:2 * N, :]              # (N, N)
    kb = b_ref[:, 0:C]                  # (N, C)  combined convk bias
    bq = b_ref[:, C:C + 1]              # (N, 1)
    wr_rows = [w_ref[2 * N + j:2 * N + j + 1, 0:C] for j in range(C)]  # C x (1, C)

    rows = []
    for b in range(B):                  # B is tiny & static: unrolled
        x_b = x_ref[b]                  # (N, C)

        # reducer Conv2d(C,C,1,1): K=C multiply-add tree on the VPU
        # (the reducer bias br is folded into kb).
        x_red = x_b[:, 0:1] * wr_rows[0]
        for j in range(1, C):
            x_red = x_red + x_b[:, j:j + 1] * wr_rows[j]          # (N, C)

        # convk / convq: (N,N)@(N,C) matmuls on the MXU (K = N).
        k_b = jnp.dot(wk, x_red, preferred_element_type=jnp.float32) + kb   # (N, C)
        q_b = jnp.dot(wq, x_b, preferred_element_type=jnp.float32) + bq     # (N, C)

        # attn^T for this batch only: keys on sublanes, queries lane-dense.
        attn_t = lax.dot_general(k_b, q_b, (((1,), (1,)), ((), ())),
                                 preferred_element_type=jnp.float32)        # (N, N)

        # AvgPool1d(kernel=N, stride=N): per-batch mean over the N positions.
        v_b = jnp.mean(x_b, axis=0, keepdims=True)                          # (1, C)

        # Fused MaxPool1d(kernel=C, stride=C) over keys + (1,G)@(G,N) on the VPU:
        # group-max over C consecutive key rows, scaled by v[g], accumulated.
        out_row = None
        for g in range(G):
            grp = attn_t[g * C:g * C + 1, :]
            for c in range(1, C):
                grp = jnp.maximum(grp, attn_t[g * C + c:g * C + c + 1, :])
            term = v_b[:, g:g + 1] * grp                                    # (1, N)
            out_row = term if out_row is None else out_row + term
        rows.append(out_row)

    o_ref[...] = jnp.concatenate(rows, axis=1).astype(o_ref.dtype)          # (1, B*N)


def pack_params(wr, br, wk, bk, wq, bq):
    """ONE-TIME parameter preprocessing (init time, not per-forward).

    Packs all weights/biases into two small slabs so the kernel takes only 3
    operands (x + 2 constants) and the convk bias is pre-combined with the
    reducer bias:  kb[o, c] = (sum_n wk[o, n]) * br[c] + bk[o].
    """
    C = wr.shape[0]
    N = wk.shape[0]
    w_slab = jnp.zeros((2 * N + C, N), jnp.float32)
    w_slab = w_slab.at[0:N, :].set(wq)
    w_slab = w_slab.at[N:2 * N, :].set(wk)
    w_slab = w_slab.at[2 * N:2 * N + C, 0:C].set(wr.T)
    kb = jnp.sum(wk, axis=1, keepdims=True) * br[None, :] + bk[:, None]     # (N, C)
    b_slab = jnp.concatenate([kb, bq[:, None]], axis=1).astype(jnp.float32) # (N, C+1)
    return w_slab, b_slab


@jax.jit
def self_attention_forward(x, w_slab, b_slab):
    """x: (B, N, C) float32. Returns (B, N, 1) (the module's `out`)."""
    B, N, C = x.shape

    flops = 2 * B * (N * C * C          # reducer FMAs
                     + 2 * N * N * C    # convk + convq matmuls
                     + N * N * C        # attention contraction
                     + (N // C) * N)    # pooled weighted sum
    bytes_accessed = 4 * (B * N * C + (2 * N + C) * N + N * (C + 1) + B * N)

    out_row = pl.pallas_call(
        _self_attention_kernel,
        out_shape=jax.ShapeDtypeStruct((1, B * N), jnp.float32),
        grid=(1,),                                    # one step: all batches at once
        in_specs=[
            pl.BlockSpec((B, N, C), lambda i: (0, 0, 0)),          # x
            pl.BlockSpec((2 * N + C, N), lambda i: (0, 0)),        # packed weights
            pl.BlockSpec((N, C + 1), lambda i: (0, 0)),            # packed biases
        ],
        out_specs=pl.BlockSpec((1, B * N), lambda i: (0, 0)),      # lane-dense row
        compiler_params=pltpu.CompilerParams(
            dimension_semantics=("arbitrary",)),
        cost_estimate=pl.CostEstimate(flops=flops, transcendentals=0,
                                      bytes_accessed=bytes_accessed),
    )(x, w_slab, b_slab)

    return out_row.reshape(B, N, 1)


def _reference_forward(x, wr, br, wk, bk, wq, bq, H, W):
    """Pure-JAX transcription of the PyTorch forward (rr == 1)."""
    B, N, C = x.shape
    x_ = jnp.transpose(x, (0, 2, 1)).reshape(B, C, H, W)
    x_ = jnp.einsum('oc,bchw->bohw', wr, x_) + br[None, :, None, None]  # reducer
    x_ = x_.reshape(B, C, -1).transpose(0, 2, 1)                         # (B, N, C)
    k = jnp.einsum('oi,bil->bol', wk, x_) + bk[None, :, None]            # convk
    q = jnp.einsum('oi,bil->bol', wq, x) + bq[None, :, None]             # convq
    attn = q @ jnp.transpose(k, (0, 2, 1))                               # (B, N, N)
    kq = attn.reshape(B, N, N // C, C).max(-1)                           # maxpool
    v = jnp.mean(jnp.transpose(x, (0, 2, 1)), axis=-1,
                 keepdims=True).transpose(0, 2, 1)                       # (B, 1, C)
    return kq @ jnp.transpose(v, (0, 2, 1))                              # (B, N, 1)


if __name__ == "__main__":
    # Small, shape-consistent configuration (see header comment).
    in_channels = 4          # C
    reduction_ratio = 1      # rr (must be 1 for the module to be consistent)
    B = 2
    C = in_channels
    H = W = C
    N = H * W                # == C*C*rr == convq channel count

    key = jax.random.PRNGKey(0)
    kx, k1, k2, k3, k4, k5, k6 = jax.random.split(key, 7)

    x = jax.random.normal(kx, (B, N, C), dtype=jnp.float32)

    # Deterministic synthetic parameters (shapes from the module's __init__, rr=1):
    wr = jax.random.normal(k1, (C, C), dtype=jnp.float32) * 0.1   # reducer  Conv2d(C,C,1,1)
    br = jax.random.normal(k2, (C,), dtype=jnp.float32) * 0.1
    wk = jax.random.normal(k3, (N, N), dtype=jnp.float32) * 0.1   # convk    Conv1d(N,N,1)
    bk = jax.random.normal(k4, (N,), dtype=jnp.float32) * 0.1
    wq = jax.random.normal(k5, (N, N), dtype=jnp.float32) * 0.1   # convq    Conv1d(N,N,1)
    bq = jax.random.normal(k6, (N,), dtype=jnp.float32) * 0.1

    # One-time parameter packing (init-time, outside the forward path).
    w_slab, b_slab = pack_params(wr, br, wk, bk, wq, bq)
    w_slab, b_slab = jax.block_until_ready((w_slab, b_slab))

    out = self_attention_forward(x, w_slab, b_slab)
    out = jax.block_until_ready(out)

    ref = _reference_forward(x, wr, br, wk, bk, wq, bq, H, W)
    ref = jax.block_until_ready(ref)

    assert out.shape == (B, N, 1), out.shape
    np.testing.assert_allclose(np.asarray(out), np.asarray(ref),
                               rtol=1e-3, atol=1e-3)
    print("KERNEL_OK")
</pallas_src>

<mosaic_0001>
module attributes {stable_mosaic.version = 11 : i64} {
  func.func @_self_attention_kernel(%arg0: i32, %arg1: memref<2x16x4xf32, #tpu.memory_space<vmem>>, %arg2: memref<36x16xf32, #tpu.memory_space<vmem>>, %arg3: memref<16x5xf32, #tpu.memory_space<vmem>>, %arg4: memref<1x32xf32, #tpu.memory_space<vmem>>) attributes {dimension_semantics = [#tpu.dimension_semantics<arbitrary>], iteration_bounds = array<i64: 1>, scalar_prefetch = 0 : i64, scratch_operands = 0 : i64, tpu.core_type = #tpu.core_type<tc>, window_params = [{pipeline_mode = #tpu.pipeline_mode<synchronous>, transform_indices = @transform_0, window_bounds = array<i64: 2, 16, 4>}, {pipeline_mode = #tpu.pipeline_mode<synchronous>, transform_indices = @transform_1, window_bounds = array<i64: 36, 16>}, {pipeline_mode = #tpu.pipeline_mode<synchronous>, transform_indices = @transform_2, window_bounds = array<i64: 16, 5>}, {pipeline_mode = #tpu.pipeline_mode<synchronous>, transform_indices = @transform_3, window_bounds = array<i64: 1, 32>}]} {
    %c0 = arith.constant 0 : index
    %c0_0 = arith.constant 0 : index
    %0 = vector.load %arg2[%c0, %c0_0] : memref<36x16xf32, #tpu.memory_space<vmem>>, vector<16x16xf32>
    %c16 = arith.constant 16 : index
    %c0_1 = arith.constant 0 : index
    %1 = vector.load %arg2[%c16, %c0_1] : memref<36x16xf32, #tpu.memory_space<vmem>>, vector<16x16xf32>
    %c0_2 = arith.constant 0 : index
    %c0_3 = arith.constant 0 : index
    %2 = vector.load %arg3[%c0_2, %c0_3] : memref<16x5xf32, #tpu.memory_space<vmem>>, vector<16x4xf32>
    %c0_4 = arith.constant 0 : index
    %c4 = arith.constant 4 : index
    %3 = vector.load %arg3[%c0_4, %c4] : memref<16x5xf32, #tpu.memory_space<vmem>>, vector<16x1xf32>
    %c32 = arith.constant 32 : index
    %c0_5 = arith.constant 0 : index
    %4 = vector.load %arg2[%c32, %c0_5] : memref<36x16xf32, #tpu.memory_space<vmem>>, vector<1x4xf32>
    %c33 = arith.constant 33 : index
    %c0_6 = arith.constant 0 : index
    %5 = vector.load %arg2[%c33, %c0_6] : memref<36x16xf32, #tpu.memory_space<vmem>>, vector<1x4xf32>
    %c34 = arith.constant 34 : index
    %c0_7 = arith.constant 0 : index
    %6 = vector.load %arg2[%c34, %c0_7] : memref<36x16xf32, #tpu.memory_space<vmem>>, vector<1x4xf32>
    %c35 = arith.constant 35 : index
    %c0_8 = arith.constant 0 : index
    %7 = vector.load %arg2[%c35, %c0_8] : memref<36x16xf32, #tpu.memory_space<vmem>>, vector<1x4xf32>
    %c0_9 = arith.constant 0 : index
    %c0_10 = arith.constant 0 : index
    %c0_11 = arith.constant 0 : index
    %8 = vector.load %arg1[%c0_9, %c0_10, %c0_11] : memref<2x16x4xf32, #tpu.memory_space<vmem>>, vector<1x16x4xf32>
    %9 = vector.shape_cast %8 : vector<1x16x4xf32> to vector<16x4xf32>
    %10 = vector.extract_strided_slice %9 {offsets = [0, 0], sizes = [16, 1], strides = [1, 1]} : vector<16x4xf32> to vector<16x1xf32>
    %11 = vector.broadcast %10 : vector<16x1xf32> to vector<16x4xf32>
    %12 = vector.broadcast %4 : vector<1x4xf32> to vector<16x4xf32>
    %13 = arith.mulf %11, %12 : vector<16x4xf32>
    %14 = vector.extract_strided_slice %9 {offsets = [0, 1], sizes = [16, 1], strides = [1, 1]} : vector<16x4xf32> to vector<16x1xf32>
    %15 = vector.broadcast %14 : vector<16x1xf32> to vector<16x4xf32>
    %16 = vector.broadcast %5 : vector<1x4xf32> to vector<16x4xf32>
    %17 = arith.mulf %15, %16 : vector<16x4xf32>
    %18 = arith.addf %13, %17 : vector<16x4xf32>
    %19 = vector.extract_strided_slice %9 {offsets = [0, 2], sizes = [16, 1], strides = [1, 1]} : vector<16x4xf32> to vector<16x1xf32>
    %20 = vector.broadcast %19 : vector<16x1xf32> to vector<16x4xf32>
    %21 = vector.broadcast %6 : vector<1x4xf32> to vector<16x4xf32>
    %22 = arith.mulf %20, %21 : vector<16x4xf32>
    %23 = arith.addf %18, %22 : vector<16x4xf32>
    %24 = vector.extract_strided_slice %9 {offsets = [0, 3], sizes = [16, 1], strides = [1, 1]} : vector<16x4xf32> to vector<16x1xf32>
    %25 = vector.broadcast %24 : vector<16x1xf32> to vector<16x4xf32>
    %26 = vector.broadcast %7 : vector<1x4xf32> to vector<16x4xf32>
    %27 = arith.mulf %25, %26 : vector<16x4xf32>
    %28 = arith.addf %23, %27 : vector<16x4xf32>
    %cst = arith.constant dense<0.000000e+00> : vector<16x4xf32>
    %29 = tpu.matmul %1, %28, %cst {dimension_numbers = #tpu.dot_dimension_numbers<[1], [0], [0], [1], [0, 0, 1, 1], [], []>} : vector<16x16xf32>, vector<16x4xf32>, vector<16x4xf32> -> vector<16x4xf32>
    %30 = arith.addf %29, %2 : vector<16x4xf32>
    %cst_12 = arith.constant dense<0.000000e+00> : vector<16x4xf32>
    %31 = tpu.matmul %0, %9, %cst_12 {dimension_numbers = #tpu.dot_dimension_numbers<[1], [0], [0], [1], [0, 0, 1, 1], [], []>} : vector<16x16xf32>, vector<16x4xf32>, vector<16x4xf32> -> vector<16x4xf32>
    %32 = vector.broadcast %3 : vector<16x1xf32> to vector<16x4xf32>
    %33 = arith.addf %31, %32 : vector<16x4xf32>
    %cst_13 = arith.constant dense<0.000000e+00> : vector<16x16xf32>
    %34 = tpu.matmul %30, %33, %cst_13 {dimension_numbers = #tpu.dot_dimension_numbers<[1], [1], [0], [0], [0, 0, 1, 0], [], []>} : vector<16x4xf32>, vector<16x4xf32>, vector<16x16xf32> -> vector<16x16xf32>
    %cst_14 = arith.constant dense<0.000000e+00> : vector<4xf32>
    %35 = vector.multi_reduction <add>, %9, %cst_14 [0] : vector<16x4xf32> to vector<4xf32>
    %36 = vector.shape_cast %35 : vector<4xf32> to vector<1x4xf32>
    %cst_15 = arith.constant 1.600000e+01 : f32
    %37 = vector.broadcast %cst_15 : f32 to vector<1x4xf32>
    %38 = arith.divf %36, %37 : vector<1x4xf32>
    %39 = vector.extract_strided_slice %34 {offsets = [0, 0], sizes = [1, 16], strides = [1, 1]} : vector<16x16xf32> to vector<1x16xf32>
    %40 = vector.extract_strided_slice %34 {offsets = [1, 0], sizes = [1, 16], strides = [1, 1]} : vector<16x16xf32> to vector<1x16xf32>
    %41 = arith.maximumf %39, %40 : vector<1x16xf32>
    %42 = vector.extract_strided_slice %34 {offsets = [2, 0], sizes = [1, 16], strides = [1, 1]} : vector<16x16xf32> to vector<1x16xf32>
    %43 = arith.maximumf %41, %42 : vector<1x16xf32>
    %44 = vector.extract_strided_slice %34 {offsets = [3, 0], sizes = [1, 16], strides = [1, 1]} : vector<16x16xf32> to vector<1x16xf32>
    %45 = arith.maximumf %43, %44 : vector<1x16xf32>
    %46 = vector.extract_strided_slice %38 {offsets = [0, 0], sizes = [1, 1], strides = [1, 1]} : vector<1x4xf32> to vector<1x1xf32>
    %47 = vector.broadcast %46 : vector<1x1xf32> to vector<1x16xf32>
    %48 = arith.mulf %47, %45 : vector<1x16xf32>
    %49 = vector.extract_strided_slice %34 {offsets = [4, 0], sizes = [1, 16], strides = [1, 1]} : vector<16x16xf32> to vector<1x16xf32>
    %50 = vector.extract_strided_slice %34 {offsets = [5, 0], sizes = [1, 16], strides = [1, 1]} : vector<16x16xf32> to vector<1x16xf32>
    %51 = arith.maximumf %49, %50 : vector<1x16xf32>
    %52 = vector.extract_strided_slice %34 {offsets = [6, 0], sizes = [1, 16], strides = [1, 1]} : vector<16x16xf32> to vector<1x16xf32>
    %53 = arith.maximumf %51, %52 : vector<1x16xf32>
    %54 = vector.extract_strided_slice %34 {offsets = [7, 0], sizes = [1, 16], strides = [1, 1]} : vector<16x16xf32> to vector<1x16xf32>
    %55 = arith.maximumf %53, %54 : vector<1x16xf32>
    %56 = vector.extract_strided_slice %38 {offsets = [0, 1], sizes = [1, 1], strides = [1, 1]} : vector<1x4xf32> to vector<1x1xf32>
    %57 = vector.broadcast %56 : vector<1x1xf32> to vector<1x16xf32>
    %58 = arith.mulf %57, %55 : vector<1x16xf32>
    %59 = arith.addf %48, %58 : vector<1x16xf32>
    %60 = vector.extract_strided_slice %34 {offsets = [8, 0], sizes = [1, 16], strides = [1, 1]} : vector<16x16xf32> to vector<1x16xf32>
    %61 = vector.extract_strided_slice %34 {offsets = [9, 0], sizes = [1, 16], strides = [1, 1]} : vector<16x16xf32> to vector<1x16xf32>
    %62 = arith.maximumf %60, %61 : vector<1x16xf32>
    %63 = vector.extract_strided_slice %34 {offsets = [10, 0], sizes = [1, 16], strides = [1, 1]} : vector<16x16xf32> to vector<1x16xf32>
    %64 = arith.maximumf %62, %63 : vector<1x16xf32>
    %65 = vector.extract_strided_slice %34 {offsets = [11, 0], sizes = [1, 16], strides = [1, 1]} : vector<16x16xf32> to vector<1x16xf32>
    %66 = arith.maximumf %64, %65 : vector<1x16xf32>
    %67 = vector.extract_strided_slice %38 {offsets = [0, 2], sizes = [1, 1], strides = [1, 1]} : vector<1x4xf32> to vector<1x1xf32>
    %68 = vector.broadcast %67 : vector<1x1xf32> to vector<1x16xf32>
    %69 = arith.mulf %68, %66 : vector<1x16xf32>
    %70 = arith.addf %59, %69 : vector<1x16xf32>
    %71 = vector.extract_strided_slice %34 {offsets = [12, 0], sizes = [1, 16], strides = [1, 1]} : vector<16x16xf32> to vector<1x16xf32>
    %72 = vector.extract_strided_slice %34 {offsets = [13, 0], sizes = [1, 16], strides = [1, 1]} : vector<16x16xf32> to vector<1x16xf32>
    %73 = arith.maximumf %71, %72 : vector<1x16xf32>
    %74 = vector.extract_strided_slice %34 {offsets = [14, 0], sizes = [1, 16], strides = [1, 1]} : vector<16x16xf32> to vector<1x16xf32>
    %75 = arith.maximumf %73, %74 : vector<1x16xf32>
    %76 = vector.extract_strided_slice %34 {offsets = [15, 0], sizes = [1, 16], strides = [1, 1]} : vector<16x16xf32> to vector<1x16xf32>
    %77 = arith.maximumf %75, %76 : vector<1x16xf32>
    %78 = vector.extract_strided_slice %38 {offsets = [0, 3], sizes = [1, 1], strides = [1, 1]} : vector<1x4xf32> to vector<1x1xf32>
    %79 = vector.broadcast %78 : vector<1x1xf32> to vector<1x16xf32>
    %80 = arith.mulf %79, %77 : vector<1x16xf32>
    %81 = arith.addf %70, %80 : vector<1x16xf32>
    %c1 = arith.constant 1 : index
    %c0_16 = arith.constant 0 : index
    %c0_17 = arith.constant 0 : index
    %82 = vector.load %arg1[%c1, %c0_16, %c0_17] : memref<2x16x4xf32, #tpu.memory_space<vmem>>, vector<1x16x4xf32>
    %83 = vector.shape_cast %82 : vector<1x16x4xf32> to vector<16x4xf32>
    %84 = vector.extract_strided_slice %83 {offsets = [0, 0], sizes = [16, 1], strides = [1, 1]} : vector<16x4xf32> to vector<16x1xf32>
    %85 = vector.broadcast %84 : vector<16x1xf32> to vector<16x4xf32>
    %86 = vector.broadcast %4 : vector<1x4xf32> to vector<16x4xf32>
    %87 = arith.mulf %85, %86 : vector<16x4xf32>
    %88 = vector.extract_strided_slice %83 {offsets = [0, 1], sizes = [16, 1], strides = [1, 1]} : vector<16x4xf32> to vector<16x1xf32>
    %89 = vector.broadcast %88 : vector<16x1xf32> to vector<16x4xf32>
    %90 = vector.broadcast %5 : vector<1x4xf32> to vector<16x4xf32>
    %91 = arith.mulf %89, %90 : vector<16x4xf32>
    %92 = arith.addf %87, %91 : vector<16x4xf32>
    %93 = vector.extract_strided_slice %83 {offsets = [0, 2], sizes = [16, 1], strides = [1, 1]} : vector<16x4xf32> to vector<16x1xf32>
    %94 = vector.broadcast %93 : vector<16x1xf32> to vector<16x4xf32>
    %95 = vector.broadcast %6 : vector<1x4xf32> to vector<16x4xf32>
    %96 = arith.mulf %94, %95 : vector<16x4xf32>
    %97 = arith.addf %92, %96 : vector<16x4xf32>
    %98 = vector.extract_strided_slice %83 {offsets = [0, 3], sizes = [16, 1], strides = [1, 1]} : vector<16x4xf32> to vector<16x1xf32>
    %99 = vector.broadcast %98 : vector<16x1xf32> to vector<16x4xf32>
    %100 = vector.broadcast %7 : vector<1x4xf32> to vector<16x4xf32>
    %101 = arith.mulf %99, %100 : vector<16x4xf32>
    %102 = arith.addf %97, %101 : vector<16x4xf32>
    %cst_18 = arith.constant dense<0.000000e+00> : vector<16x4xf32>
    %103 = tpu.matmul %1, %102, %cst_18 {dimension_numbers = #tpu.dot_dimension_numbers<[1], [0], [0], [1], [0, 0, 1, 1], [], []>} : vector<16x16xf32>, vector<16x4xf32>, vector<16x4xf32> -> vector<16x4xf32>
    %104 = arith.addf %103, %2 : vector<16x4xf32>
    %cst_19 = arith.constant dense<0.000000e+00> : vector<16x4xf32>
    %105 = tpu.matmul %0, %83, %cst_19 {dimension_numbers = #tpu.dot_dimension_numbers<[1], [0], [0], [1], [0, 0, 1, 1], [], []>} : vector<16x16xf32>, vector<16x4xf32>, vector<16x4xf32> -> vector<16x4xf32>
    %106 = vector.broadcast %3 : vector<16x1xf32> to vector<16x4xf32>
    %107 = arith.addf %105, %106 : vector<16x4xf32>
    %cst_20 = arith.constant dense<0.000000e+00> : vector<16x16xf32>
    %108 = tpu.matmul %104, %107, %cst_20 {dimension_numbers = #tpu.dot_dimension_numbers<[1], [1], [0], [0], [0, 0, 1, 0], [], []>} : vector<16x4xf32>, vector<16x4xf32>, vector<16x16xf32> -> vector<16x16xf32>
    %cst_21 = arith.constant dense<0.000000e+00> : vector<4xf32>
    %109 = vector.multi_reduction <add>, %83, %cst_21 [0] : vector<16x4xf32> to vector<4xf32>
    %110 = vector.shape_cast %109 : vector<4xf32> to vector<1x4xf32>
    %cst_22 = arith.constant 1.600000e+01 : f32
    %111 = vector.broadcast %cst_22 : f32 to vector<1x4xf32>
    %112 = arith.divf %110, %111 : vector<1x4xf32>
    %113 = vector.extract_strided_slice %108 {offsets = [0, 0], sizes = [1, 16], strides = [1, 1]} : vector<16x16xf32> to vector<1x16xf32>
    %114 = vector.extract_strided_slice %108 {offsets = [1, 0], sizes = [1, 16], strides = [1, 1]} : vector<16x16xf32> to vector<1x16xf32>
    %115 = arith.maximumf %113, %114 : vector<1x16xf32>
    %116 = vector.extract_strided_slice %108 {offsets = [2, 0], sizes = [1, 16], strides = [1, 1]} : vector<16x16xf32> to vector<1x16xf32>
    %117 = arith.maximumf %115, %116 : vector<1x16xf32>
    %118 = vector.extract_strided_slice %108 {offsets = [3, 0], sizes = [1, 16], strides = [1, 1]} : vector<16x16xf32> to vector<1x16xf32>
    %119 = arith.maximumf %117, %118 : vector<1x16xf32>
    %120 = vector.extract_strided_slice %112 {offsets = [0, 0], sizes = [1, 1], strides = [1, 1]} : vector<1x4xf32> to vector<1x1xf32>
    %121 = vector.broadcast %120 : vector<1x1xf32> to vector<1x16xf32>
    %122 = arith.mulf %121, %119 : vector<1x16xf32>
    %123 = vector.extract_strided_slice %108 {offsets = [4, 0], sizes = [1, 16], strides = [1, 1]} : vector<16x16xf32> to vector<1x16xf32>
    %124 = vector.extract_strided_slice %108 {offsets = [5, 0], sizes = [1, 16], strides = [1, 1]} : vector<16x16xf32> to vector<1x16xf32>
    %125 = arith.maximumf %123, %124 : vector<1x16xf32>
    %126 = vector.extract_strided_slice %108 {offsets = [6, 0], sizes = [1, 16], strides = [1, 1]} : vector<16x16xf32> to vector<1x16xf32>
    %127 = arith.maximumf %125, %126 : vector<1x16xf32>
    %128 = vector.extract_strided_slice %108 {offsets = [7, 0], sizes = [1, 16], strides = [1, 1]} : vector<16x16xf32> to vector<1x16xf32>
    %129 = arith.maximumf %127, %128 : vector<1x16xf32>
    %130 = vector.extract_strided_slice %112 {offsets = [0, 1], sizes = [1, 1], strides = [1, 1]} : vector<1x4xf32> to vector<1x1xf32>
    %131 = vector.broadcast %130 : vector<1x1xf32> to vector<1x16xf32>
    %132 = arith.mulf %131, %129 : vector<1x16xf32>
    %133 = arith.addf %122, %132 : vector<1x16xf32>
    %134 = vector.extract_strided_slice %108 {offsets = [8, 0], sizes = [1, 16], strides = [1, 1]} : vector<16x16xf32> to vector<1x16xf32>
    %135 = vector.extract_strided_slice %108 {offsets = [9, 0], sizes = [1, 16], strides = [1, 1]} : vector<16x16xf32> to vector<1x16xf32>
    %136 = arith.maximumf %134, %135 : vector<1x16xf32>
    %137 = vector.extract_strided_slice %108 {offsets = [10, 0], sizes = [1, 16], strides = [1, 1]} : vector<16x16xf32> to vector<1x16xf32>
    %138 = arith.maximumf %136, %137 : vector<1x16xf32>
    %139 = vector.extract_strided_slice %108 {offsets = [11, 0], sizes = [1, 16], strides = [1, 1]} : vector<16x16xf32> to vector<1x16xf32>
    %140 = arith.maximumf %138, %139 : vector<1x16xf32>
    %141 = vector.extract_strided_slice %112 {offsets = [0, 2], sizes = [1, 1], strides = [1, 1]} : vector<1x4xf32> to vector<1x1xf32>
    %142 = vector.broadcast %141 : vector<1x1xf32> to vector<1x16xf32>
    %143 = arith.mulf %142, %140 : vector<1x16xf32>
    %144 = arith.addf %133, %143 : vector<1x16xf32>
    %145 = vector.extract_strided_slice %108 {offsets = [12, 0], sizes = [1, 16], strides = [1, 1]} : vector<16x16xf32> to vector<1x16xf32>
    %146 = vector.extract_strided_slice %108 {offsets = [13, 0], sizes = [1, 16], strides = [1, 1]} : vector<16x16xf32> to vector<1x16xf32>
    %147 = arith.maximumf %145, %146 : vector<1x16xf32>
    %148 = vector.extract_strided_slice %108 {offsets = [14, 0], sizes = [1, 16], strides = [1, 1]} : vector<16x16xf32> to vector<1x16xf32>
    %149 = arith.maximumf %147, %148 : vector<1x16xf32>
    %150 = vector.extract_strided_slice %108 {offsets = [15, 0], sizes = [1, 16], strides = [1, 1]} : vector<16x16xf32> to vector<1x16xf32>
    %151 = arith.maximumf %149, %150 : vector<1x16xf32>
    %152 = vector.extract_strided_slice %112 {offsets = [0, 3], sizes = [1, 1], strides = [1, 1]} : vector<1x4xf32> to vector<1x1xf32>
    %153 = vector.broadcast %152 : vector<1x1xf32> to vector<1x16xf32>
    %154 = arith.mulf %153, %151 : vector<1x16xf32>
    %155 = arith.addf %144, %154 : vector<1x16xf32>
    %156 = tpu.concatenate %81, %155 in 1 : vector<1x16xf32>, vector<1x16xf32> -> vector<1x32xf32>
    %c0_23 = arith.constant 0 : index
    %c0_24 = arith.constant 0 : index
    %157 = vector.load %arg4[%c0_23, %c0_24] : memref<1x32xf32, #tpu.memory_space<vmem>>, vector<1x32xf32>
    tpu.vector_store %arg4[%c0_23, %c0_24], %156 {strides = array<i32>} : memref<1x32xf32, #tpu.memory_space<vmem>>, vector<1x32xf32>,
    return
  }
  func.func @transform_0(%arg0: i32) -> (i32, i32, i32) {
    %c0_i32 = arith.constant 0 : i32
    %c0_i32_0 = arith.constant 0 : i32
    %c0_i32_1 = arith.constant 0 : i32
    %c0_i32_2 = arith.constant 0 : i32
    return %c0_i32, %c0_i32_0, %c0_i32_1 : i32, i32, i32
  }
  func.func @transform_1(%arg0: i32) -> (i32, i32) {
    %c0_i32 = arith.constant 0 : i32
    %c0_i32_0 = arith.constant 0 : i32
    %c0_i32_1 = arith.constant 0 : i32
    return %c0_i32, %c0_i32_0 : i32, i32
  }
  func.func @transform_2(%arg0: i32) -> (i32, i32) {
    %c0_i32 = arith.constant 0 : i32
    %c0_i32_0 = arith.constant 0 : i32
    %c0_i32_1 = arith.constant 0 : i32
    return %c0_i32, %c0_i32_0 : i32, i32
  }
  func.func @transform_3(%arg0: i32) -> (i32, i32) {
    %c0_i32 = arith.constant 0 : i32
    %c0_i32_0 = arith.constant 0 : i32
    %c0_i32_1 = arith.constant 0 : i32
    return %c0_i32, %c0_i32_0 : i32, i32
  }
}

</mosaic_0001>

<bundles_post_ra>
// kernel: self_attention_forward.1
= control target key start
LH: loop header
LB: loop body
LE: loop exit
PB: predicated region body
PF: predicated region fallthrough
CT: control target
= control target key end

     0   :  { %v888_v0 = vmov 2   ;;  %v889_v1 = vmov 0   ;;  %v890_v4 = vmov 1   ;;  %v891_v6 = vmov 3   ;;  %s1055_s0 = inlined_call_operand.vmem [shape: f32[2,16,4], index: 0, kind: input, shape index: {}]   ;;  %s1056_s1 = inlined_call_operand.vmem [shape: f32[36,16], index: 1, kind: input, shape index: {}]   ;;  %s1057_s2 = inlined_call_operand.vmem [shape: f32[16,5], index: 2, kind: input, shape index: {}]   ;;  %s1058_s3 = inlined_call_operand.vmem [shape: f32[1,32], index: 3, kind: output, shape index: {}]  }
   0x1   :  { %868 = vset.pattern.permute.xlu0 %v888_v0  ;;  %865 = vset.pattern.permute.xlu1 %v889_v1  ;;  %v919_v2 = vld [vmem:[%s1055_s0] sm:$0xff]  ;;  %v926_v3 = vld [vmem:[%s1055_s0 + $0x8] sm:$0xff]  ;;  %v935_v5 = vld [vmem:[%s1055_s0 + $0x18] sm:$0xff]  ;;  %vm90_vm0 = vcmask 130048   ;;  %v892_v9 = vmov 4   ;;  %vm263_vm1 = vcmask 31744  }
   0x2   :  { %59 = vperm.xlu0 %868, %v919_v2   ;;  %28 = vperm.xlu1 %865, %v919_v2   ;;  %v947_v7 = vld [vmem:[%s1055_s0 + $0x10] sm:$0xff]  ;;  %v972_v10 = vld [vmem:[%s1057_s2 + $0x8] sm:$0xff]  ;;  %v977_v11 = vld [vmem:[%s1057_s2] sm:$0xff]  ;;  %vm765_vm2 = vcmask 253952  }
   0x3   :  { %v954_v8 = vld [vmem:[%s1056_s1 + $0x10] sm:$0xff]  ;;  %v772_v16 = vld [vmem:[%s1056_s1 + $0x21] ss:$0 sm:$0xff]  ;;  %v771_v19 = vld [vmem:[%s1056_s1 + $0x20] ss:$0 sm:$0xff]  ;;  %v700_v63 = vsel %vm263_vm1, %v947_v7, 0.0 }
   0x4   :  { %821 = vmatprep.mubr.msk.f32.mxu1 %vm90_vm0, %v954_v8  ;;  %v773_v21 = vld [vmem:[%s1056_s1 + $0x22] ss:$0 sm:$0xff]  ;;  %v774_v29 = vld [vmem:[%s1056_s1 + $0x23] ss:$0 sm:$0xff]  ;;  %v17_v40 = vld [vmem:[%s1056_s1 + $0x18] sm:$0xff] }
   0x5   :  { %v14_v41 = vld [vmem:[%s1056_s1] sm:$0xff]  ;;  %v15_v43 = vld [vmem:[%s1056_s1 + $0x8] sm:$0xff]  ;;  %s893_s1 = smov 16  }
   0x6   :  { %869 = vset.pattern.permute.xlu0 %v889_v1  ;;  %866 = vset.pattern.permute.xlu1 %v890_v4 }
   0x7   :  { %33 = vperm.xlu0 %869, %v926_v3   ;;  %43 = vperm.xlu1 %866, %v919_v2  }
   0xb   :  { %422 = vperm.xlu0 %869, %v935_v5   ;;  %867 = vset.pattern.permute.xlu1 %v888_v0 }
   0xc   :  { %63 = vperm.xlu1 %867, %v926_v3  }
   0xf   :  { %871 = vset.pattern.permute.xlu0 %v890_v4 }
  0x10   :  { %47 = vperm.xlu0 %871, %v926_v3   ;;  %870 = vset.pattern.permute.xlu1 %v891_v6 }
  0x11   :  { %79 = vperm.xlu1 %870, %v926_v3  }
  0x14   :  { %428 = vperm.xlu0 %871, %v947_v7  }
  0x15   :  { %75 = vperm.xlu1 %870, %v919_v2  }
  0x18   :  { %875 = vset.pattern.permute.xlu0 %v891_v6 }
  0x19   :  { %872 = vset.pattern.permute.xlu1 %v890_v4  ;;  %456 = vperm.xlu0 %875, %v935_v5  }
  0x1a   :  { %432 = vperm.xlu1 %872, %v935_v5  }
  0x1d   :  { %878 = vset.pattern.permute.xlu0 %v892_v9 }
  0x1e   :  { %873 = vset.pattern.permute.xlu1 %v889_v1  ;;  %174 = vperm.xlu0 %878, %v977_v11  }
  0x1f   :  { %417 = vperm.xlu1 %873, %v947_v7  }
  0x22   :  { %881 = vset.pattern.permute.xlu0 %v888_v0 }
  0x23   :  { %874 = vset.pattern.permute.xlu1 %v888_v0 }
  0x24   :  { %444 = vperm.xlu1 %874, %v935_v5  }
  0x28   :  { %440 = vperm.xlu1 %874, %v947_v7  }
  0x2c   :  { %876 = vset.pattern.permute.xlu1 %v891_v6 }
  0x2d   :  { %452 = vperm.xlu1 %876, %v947_v7  }
  0x31   :  { %877 = vset.pattern.permute.xlu1 %v892_v9  ;;  %v351_v9 = vsel %vm263_vm1, %v919_v2, 0.0 }
  0x32   :  { %179 = vperm.xlu1 %877, %v972_v10  }
  0x36   :  { %879 = vset.pattern.permute.xlu1 %v890_v4 }
  0x7d   :  { %v29_v12 = vpop.permute.xlu1 %28  ;;  %v60_v13 = vpop.permute.xlu0 %59 }
  0x7e   :  { %v40_v23 = vmul.f32 %v771_v19, %v29_v12  ;;  %v70_v27 = vmul.f32 %v773_v21, %v60_v13  ;;  %v352_v12 = vsel %vm263_vm1, %v926_v3, 0.0 }
  0x82   :  { %v44_v14 = vpop.permute.xlu1 %43  ;;  %v34_v15 = vpop.permute.xlu0 %33 }
  0x83   :  { %v54_v20 = vmul.f32 %v772_v16, %v44_v14  ;;  %v41_v22 = vmul.f32 %v771_v19, %v34_v15  ;;  %v353_v14 = vadd.f32 %v352_v12, %v351_v9 }
  0x85   :  { %v56_v28 = vadd.f32 %v54_v20, %v40_v23 }
  0x86   :  { %v423_v17 = vpop.permute.xlu0 %422 }
  0x87   :  { %v64_v18 = vpop.permute.xlu1 %63  ;;  %v72_v35 = vadd.f32 %v70_v27, %v56_v28  ;;  %v426_v47 = vmul.f32 %v771_v19, %v423_v17 }
  0x88   :  { %v71_v30 = vmul.f32 %v773_v21, %v64_v18 }
  0x8b   :  { %v48_v24 = vpop.permute.xlu0 %47 }
  0x8c   :  { %v55_v25 = vmul.f32 %v772_v16, %v48_v24  ;;  %v80_v26 = vpop.permute.xlu1 %79 }
  0x8d   :  { %v87_v32 = vmul.f32 %v774_v29, %v80_v26 }
  0x8e   :  { %v57_v31 = vadd.f32 %v55_v25, %v41_v22 }
  0x8f   :  { %v429_v42 = vpop.permute.xlu0 %428 }
  0x90   :  { %v76_v33 = vpop.permute.xlu1 %75  ;;  %v73_v34 = vadd.f32 %v71_v30, %v57_v31  ;;  %v435_v53 = vmul.f32 %v772_v16, %v429_v42 }
  0x91   :  { %v86_v36 = vmul.f32 %v774_v29, %v76_v33 }
  0x92   :  { %v89_v37 = vadd.f32 %v87_v32, %v73_v34 }
  0x93   :  { %v88_v38 = vadd.f32 %v86_v36, %v72_v35 }
  0x94   :  { %817 = vmatprep.subr.mxu1 %v89_v37  ;;  %v457_v46 = vpop.permute.xlu0 %456 }
  0x95   :  { %818 = vmatpush3.msra.mxu1 %v89_v37  ;;  %v433_v39 = vpop.permute.xlu1 %432  ;;  %v460_v51 = vmul.f32 %v774_v29, %v457_v46 }
  0x96   :  { %819 = vmatprep.subr.mxu1 %v88_v38  ;;  %v436_v45 = vmul.f32 %v772_v16, %v433_v39  ;;  %v354_v16 = vrot.slane %v353_v14, 4 }
  0x97   :  { %820 = vmatpush3.msra.mxu1 %v88_v38 }
  0x98   :  { %822 = vmatmul.mubr.msk.f32.vlgmr.msra.gmra.mxu1 %vm90_vm0, %v17_v40  ;;  %824 = vmatprep.subr.mxu1 %v926_v3  ;;  %v438_v49 = vadd.f32 %v436_v45, %v426_v47  ;;  %v355_v18 = vadd.f32 %v354_v16, %v353_v14 }
  0x99   :  { %825 = vmatpush3.msra.mxu1 %v926_v3  ;;  %828 = vmatprep.mubr.msk.f32.mxu1 %vm90_vm0, %v14_v41 }
  0x9a   :  { %826 = vmatprep.subr.mxu1 %v919_v2  ;;  %v418_v44 = vpop.permute.xlu1 %417  ;;  %v356_v20 = vrot.slane %v355_v18, 2 }
  0x9b   :  { %827 = vmatpush3.msra.mxu1 %v919_v2  ;;  %v425_v54 = vmul.f32 %v771_v19, %v418_v44 }
  0x9c   :  { %829 = vmatmul.mubr.msk.f32.vlgmr.msra.gmra.mxu1 %vm90_vm0, %v15_v43  ;;  %v357_v22 = vadd.f32 %v356_v20, %v355_v18 }
  0x9d   :  { %842 = vmatprep.mubr.msk.f32.mxu1 %vm90_vm0, %v954_v8  ;;  %v437_v58 = vadd.f32 %v435_v53, %v425_v54  ;;  %v701_v8 = vsel %vm263_vm1, %v935_v5, 0.0 }
  0x9e   :  { %v702_v13 = vadd.f32 %v701_v8, %v700_v63  ;;  %v358_v23 = vrot.slane %v357_v22, 1 }
  0x9f   :  { %v445_v48 = vpop.permute.xlu1 %444 }
  0xa0   :  { %v448_v50 = vmul.f32 %v773_v21, %v445_v48  ;;  %v703_v15 = vrot.slane %v702_v13, 4  ;;  %v359_v25 = vadd.f32 %v358_v23, %v357_v22 }
  0xa2   :  { %v450_v52 = vadd.f32 %v448_v50, %v438_v49  ;;  %v704_v17 = vadd.f32 %v703_v15, %v702_v13  ;;  %v361_v2 = vmul.f32 0.0625, %v359_v25 }
  0xa3   :  { %v441_v55 = vpop.permute.xlu1 %440 }
  0xa4   :  { %v462_v56 = vadd.f32 %v460_v51, %v450_v52  ;;  %v447_v57 = vmul.f32 %v773_v21, %v441_v55  ;;  %v705_v19 = vrot.slane %v704_v17, 2 }
  0xa6   :  { %838 = vmatprep.subr.mxu1 %v462_v56  ;;  %v449_v60 = vadd.f32 %v447_v57, %v437_v58  ;;  %v706_v21 = vadd.f32 %v705_v19, %v704_v17 }
  0xa7   :  { %839 = vmatpush3.msra.mxu1 %v462_v56 }
  0xa8   :  { %v453_v59 = vpop.permute.xlu1 %452 }
  0xa9   :  { %v459_v61 = vmul.f32 %v774_v29, %v453_v59  ;;  %v175_v29 = vpop.permute.xlu0 %174 }
  0xab   :  { %v461_v62 = vadd.f32 %v459_v61, %v449_v60 }
  0xad   :  { %840 = vmatprep.subr.mxu1 %v461_v62  ;;  %v180_v27 = vpop.permute.xlu1 %179 }
  0xae   :  { %841 = vmatpush3.msra.mxu1 %v461_v62 }
  0xaf   :  { %843 = vmatmul.mubr.msk.f32.vlgmr.msra.gmra.mxu1 %vm90_vm0, %v17_v40  ;;  %845 = vmatprep.subr.mxu1 %v935_v5 }
  0xb0   :  { %846 = vmatpush3.msra.mxu1 %v935_v5  ;;  %849 = vmatprep.mubr.msk.f32.mxu1 %vm90_vm0, %v14_v41 }
  0xb1   :  { %847 = vmatprep.subr.mxu1 %v947_v7 }
  0xb2   :  { %848 = vmatpush3.msra.mxu1 %v947_v7  ;;  %v707_v7 = vrot.slane %v706_v21, 1 }
  0xb3   :  { %850 = vmatmul.mubr.msk.f32.vlgmr.msra.gmra.mxu1 %vm90_vm0, %v15_v43 }
  0xb4   :  { %v708_v24 = vadd.f32 %v707_v7, %v706_v21 }
  0xb6   :  { %v709_v5 = vmul.f32 0.0625, %v708_v24 }
  0xb8   :  { %727 = vperm.xlu1 %879, %v709_v5   ;;  %746 = vperm.xlu0 %881, %v709_v5  }
  0xbc   :  { %880 = vset.pattern.permute.xlu1 %v889_v1  ;;  %884 = vset.pattern.permute.xlu0 %v889_v1 }
  0xbd   :  { %722 = vperm.xlu1 %880, %v709_v5   ;;  %374 = vperm.xlu0 %884, %v361_v2  }
  0xc1   :  { %882 = vset.pattern.permute.xlu1 %v891_v6  ;;  %887 = vset.pattern.permute.xlu0 %v891_v6 }
  0xc2   :  { %752 = vperm.xlu1 %882, %v709_v5  }
  0xc6   :  { %883 = vset.pattern.permute.xlu1 %v890_v4 }
  0xc7   :  { %379 = vperm.xlu1 %883, %v361_v2  }
  0xcb   :  { %885 = vset.pattern.permute.xlu1 %v888_v0 }
  0xcc   :  { %398 = vperm.xlu1 %885, %v361_v2  }
  0xd0   :  { %886 = vset.pattern.permute.xlu1 %v891_v6 }
  0xd1   :  { %404 = vperm.xlu1 %886, %v361_v2  }
 0x133   :  { %v728_v39 = vpop.permute.xlu1 %727  ;;  %v747_v50 = vpop.permute.xlu0 %746 }
 0x138   :  { %v375_v58 = vpop.permute.xlu0 %374 }
 0x158   :  { %v823_v3 = vpop.f32.mrf.mxu1 }
 0x159   :  { %v169_v0 = vadd.f32 %v823_v3, %v972_v10 }
 0x15a   :  { %v163_v26 = vpop.f32.mrf.mxu1 }
 0x15b   :  { %v164_v1 = vadd.f32 %v163_v26, %v977_v11 }
 0x15c   :  { %v830_v28 = vpop.f32.mrf.mxu1 }
 0x15d   :  { %v260_v30 = vadd.f32 %v830_v28, %v180_v27  ;;  %835 = vmatprep.mubr.msk.f32.mxu0 %vm263_vm1, %v164_v1 }
 0x15e   :  { %v254_v31 = vpop.f32.mrf.mxu1 }
 0x15f   :  { %831 = vmatprep.subr.msk.mxu0 %vm263_vm1, %v260_v30  ;;  %v255_v4 = vadd.f32 %v254_v31, %v175_v29 }
 0x160   :  { %832 = vmatpush3.xpose.msk.msra.mxu0 %vm263_vm1, %v260_v30 }
 0x161   :  { %833 = vmatprep.subr.msk.mxu0 %vm263_vm1, %v255_v4 }
 0x164   :  { %834 = vmatpush3.xpose.msk.msra.mxu0 %vm263_vm1, %v255_v4 }
 0x167   :  { %836 = vmatmul.mubr.msk.f32.vlgmr.msra.gmra.mxu0 %vm263_vm1, %v169_v0 }
 0x16f   :  { %v844_v6 = vpop.f32.mrf.mxu1 }
 0x170   :  { %v535_v38 = vadd.f32 %v844_v6, %v972_v10 }
 0x171   :  { %v529_v32 = vpop.f32.mrf.mxu1 }
 0x172   :  { %v530_v33 = vadd.f32 %v529_v32, %v977_v11  ;;  %v723_v11 = vpop.permute.xlu1 %722 }
 0x173   :  { %v851_v34 = vpop.f32.mrf.mxu1 }
 0x174   :  { %v610_v35 = vadd.f32 %v851_v34, %v180_v27  ;;  %856 = vmatprep.mubr.msk.f32.mxu0 %vm263_vm1, %v530_v33 }
 0x175   :  { %v604_v36 = vpop.f32.mrf.mxu1 }
 0x176   :  { %v605_v37 = vadd.f32 %v604_v36, %v175_v29  ;;  %852 = vmatprep.subr.msk.mxu0 %vm263_vm1, %v610_v35  ;;  %v753_v40 = vpop.permute.xlu1 %752 }
 0x177   :  { %853 = vmatpush3.xpose.msk.msra.mxu0 %vm263_vm1, %v610_v35 }
 0x178   :  { %854 = vmatprep.subr.msk.mxu0 %vm263_vm1, %v605_v37 }
 0x17a   :  { %v380_v41 = vpop.permute.xlu1 %379 }
 0x17b   :  { %855 = vmatpush3.xpose.msk.msra.mxu0 %vm263_vm1, %v605_v37 }
 0x17e   :  { %857 = vmatmul.mubr.msk.f32.vlgmr.msra.gmra.mxu0 %vm263_vm1, %v535_v38  ;;  %v399_v49 = vpop.permute.xlu1 %398 }
 0x182   :  { %v405_v57 = vpop.permute.xlu1 %404 }
 0x227   :  { %v837_v42 = vpop.f32.mrf.mxu0 }
 0x228   :  { %v388_v43 = vrot.slane %v837_v42, 1  ;;  %v391_v44 = vrot.slane %v837_v42, 2  ;;  %v394_v53 = vrot.slane %v837_v42, 3 }
 0x229   :  { %v342_v45 = vpop.f32.mrf.mxu0 }
 0x22a   :  { %v390_v46 = vmax.f32 %v837_v42, %v388_v43  ;;  %v363_v47 = vrot.slane %v342_v45, 1  ;;  %v366_v48 = vrot.slane %v342_v45, 2  ;;  %v369_v10 = vrot.slane %v342_v45, 3 }
 0x22c   :  { %v365_v51 = vmax.f32 %v342_v45, %v363_v47  ;;  %v393_v52 = vmax.f32 %v390_v46, %v391_v44 }
 0x22e   :  { %v368_v54 = vmax.f32 %v365_v51, %v366_v48  ;;  %v396_v55 = vmax.f32 %v393_v52, %v394_v53 }
 0x230   :  { %v371_v56 = vmax.f32 %v368_v54, %v369_v10  ;;  %v407_v60 = vmul.f32 %v405_v57, %v396_v55  ;;  %v401_v63 = vmul.f32 %v399_v49, %v396_v55 }
 0x232   :  { %v382_v59 = vmul.f32 %v380_v41, %v371_v56  ;;  %v377_v61 = vmul.f32 %v375_v58, %v371_v56  ;;  %v409_v9 = vrot.slane %v407_v60, 4 }
 0x234   :  { %v384_v62 = vrot.slane %v382_v59, 4 }
 0x236   :  { %v386_v8 = vadd.f32 %v384_v62, %v377_v61 }
 0x238   :  { %v402_v12 = vadd.f32 %v401_v63, %v386_v8 }
 0x23a   :  { %v411_v13 = vadd.f32 %v409_v9, %v402_v12 }
 0x23e   :  { %v858_v14 = vpop.f32.mrf.mxu0 }
 0x23f   :  { %v736_v15 = vrot.slane %v858_v14, 1  ;;  %v739_v18 = vrot.slane %v858_v14, 2  ;;  %v742_v7 = vrot.slane %v858_v14, 3 }
 0x240   :  { %v691_v16 = vpop.f32.mrf.mxu0 }
 0x241   :  { %v738_v17 = vmax.f32 %v858_v14, %v736_v15  ;;  %v711_v19 = vrot.slane %v691_v16, 1  ;;  %v714_v22 = vrot.slane %v691_v16, 2  ;;  %v717_v24 = vrot.slane %v691_v16, 3 }
 0x243   :  { %v741_v20 = vmax.f32 %v738_v17, %v739_v18  ;;  %v713_v21 = vmax.f32 %v691_v16, %v711_v19 }
 0x245   :  { %v716_v23 = vmax.f32 %v713_v21, %v714_v22  ;;  %v744_v5 = vmax.f32 %v741_v20, %v742_v7 }
 0x247   :  { %v719_v25 = vmax.f32 %v716_v23, %v717_v24  ;;  %v755_v27 = vmul.f32 %v753_v40, %v744_v5  ;;  %v749_v28 = vmul.f32 %v747_v50, %v744_v5 }
 0x249   :  { %v730_v2 = vmul.f32 %v728_v39, %v719_v25  ;;  %v725_v3 = vmul.f32 %v723_v11, %v719_v25  ;;  %v757_v30 = vrot.slane %v755_v27, 4 }
 0x24b   :  { %v732_v26 = vrot.slane %v730_v2, 4 }
 0x24d   :  { %v734_v1 = vadd.f32 %v732_v26, %v725_v3 }
 0x24f   :  { %v750_v29 = vadd.f32 %v749_v28, %v734_v1 }
 0x251   :  { %v759_v31 = vadd.f32 %v757_v30, %v750_v29 }
 0x253   :  { %761 = vrot.lane.b32.xlu0 %v759_v31, %s893_s1 }
 0x2c5   :  { %v762_v4 = vpop.permute.xlu0 %761 }
 0x2c6   :  { %v764_v0 = vsel %vm90_vm0, %v411_v13, %v762_v4 }
 0x2c7   :  { %766 = vst.msk [vmem:[%s1058_s3] sm:$0x1] %vm765_vm2, %v764_v0 }

</bundles_post_ra>
